<compile_context>
chip_gen: v7x
topology: tpu7x:2x2x1
jax: 0.10.0
libtpu: 0.0.40
codegen_flags: <defaults>
</compile_context>

<pallas_src>
import functools

import numpy as np
import jax
import jax.numpy as jnp
from jax.experimental import pallas as pl
from jax.experimental.pallas import tpu as pltpu

_LANES = 128
_ROW_MULT = 32                    # multiple of min sublane tile for f32 (8) and bf16 (16)
_VMEM_BUDGET = 8 * 1024 * 1024    # double-buffered footprint target; < 16 MiB v5e scoped default
_SMALL_N = 1 << 16                # below this, let XLA fuse instead of a standalone pallas_call


def _round_up(x, m):
    return ((x + m - 1) // m) * m


def _sigma_only_kernel_factory(dist_type, minstd, maxstd, minlogstd, maxlogstd):
    """Kernel for dist types where mu passes through unchanged: logstd -> sigma only."""

    def kernel(logstd_ref, sigma_ref):
        logstd = logstd_ref[...].astype(jnp.float32)
        if dist_type == 'normal':
            sigma = jnp.exp(logstd)
        elif dist_type == 'squashed_normal':
            if (minlogstd is not None) or (maxlogstd is not None):
                logstd = jnp.clip(logstd, minlogstd, maxlogstd)
            sigma = jnp.exp(logstd)
        elif dist_type == 'dreamerv3_squashed_normal':
            sigma = (maxstd - minstd) * jax.nn.sigmoid(logstd + 2.0) + minstd
        else:
            raise NotImplementedError(dist_type)
        sigma_ref[...] = sigma.astype(sigma_ref.dtype)

    return kernel


def _dreamer_normal_kernel(mu_ref, logstd_ref, mu_out_ref, sigma_ref, *, minstd, maxstd):
    """dreamerv3_normal: both mu (tanh) and sigma are transformed."""
    sigma = (maxstd - minstd) * jax.nn.sigmoid(logstd_ref[...].astype(jnp.float32) + 2.0) + minstd
    mu_out_ref[...] = jnp.tanh(mu_ref[...].astype(jnp.float32)).astype(mu_out_ref.dtype)
    sigma_ref[...] = sigma.astype(sigma_ref.dtype)


def _forward_jnp(mu, logstd, dist_type, minstd, maxstd, minlogstd, maxlogstd):
    """Pure-JAX forward (minstd/maxstd already resolved from log bounds)."""
    if dist_type == 'normal':
        return mu, jnp.exp(logstd)
    if dist_type == 'squashed_normal':
        ls = logstd
        if (minlogstd is not None) or (maxlogstd is not None):
            ls = jnp.clip(ls, minlogstd, maxlogstd)
        return mu, jnp.exp(ls)
    if dist_type == 'dreamerv3_normal':
        std = (maxstd - minstd) * jax.nn.sigmoid(logstd + 2.0) + minstd
        return jnp.tanh(mu), std
    if dist_type == 'dreamerv3_squashed_normal':
        std = (maxstd - minstd) * jax.nn.sigmoid(logstd + 2.0) + minstd
        return mu, std
    raise NotImplementedError(dist_type)


def _as_lane_slab(x, rows_padded):
    """Flatten x and zero-pad into a lane-dense (rows_padded, 128) slab."""
    flat = x.reshape(-1)
    pad = rows_padded * _LANES - flat.shape[0]
    if pad:
        flat = jnp.pad(flat, (0, pad))
    return flat.reshape(rows_padded, _LANES)


def dist_forward(mu, logstd, *, dist_type='normal', minstd=1.0, maxstd=1.0,
                 minlogstd=None, maxlogstd=None, force_pallas=False):
    """Pallas equivalent of Dist(dist_type, ...).forward(mu, logstd) -> (mu', sigma)."""
    # __init__ semantics: log-std bounds override std bounds.
    if minlogstd is not None:
        minstd = float(np.exp(minlogstd))
    if maxlogstd is not None:
        maxstd = float(np.exp(maxlogstd))

    assert mu.shape == logstd.shape
    orig_shape = mu.shape
    n = int(np.prod(orig_shape))
    dtype = mu.dtype
    transform_mu = (dist_type == 'dreamerv3_normal')

    # Tiny RL-head shapes: a standalone pallas_call costs more than the data it moves.
    if (not force_pallas) and n < _SMALL_N:
        return _forward_jnp(mu, logstd, dist_type, minstd, maxstd, minlogstd, maxlogstd)

    # ---- tile sizing against a per-chip-safe VMEM budget (double-buffered) ----
    n_streams = 4 if transform_mu else 2            # arrays streamed through the kernel
    itemsize = jnp.dtype(dtype).itemsize
    bytes_per_row = n_streams * 2 * _LANES * itemsize   # 2x for double buffering
    tb_max = max(_ROW_MULT, (_VMEM_BUDGET // bytes_per_row) // _ROW_MULT * _ROW_MULT)

    rows_needed = pl.cdiv(n, _LANES)
    tb = min(tb_max, _round_up(rows_needed, _ROW_MULT))
    rows_padded = _round_up(rows_needed, tb)        # grid divides evenly; no ragged block
    grid = (rows_padded // tb,)
    blk = pl.BlockSpec((tb, _LANES), lambda i: (i, 0))

    logstd_slab = _as_lane_slab(logstd, rows_padded)

    if transform_mu:
        mu_slab = _as_lane_slab(mu, rows_padded)
        kernel = functools.partial(_dreamer_normal_kernel, minstd=minstd, maxstd=maxstd)
        mu_o, sigma_o = pl.pallas_call(
            kernel,
            out_shape=(jax.ShapeDtypeStruct((rows_padded, _LANES), dtype),
                       jax.ShapeDtypeStruct((rows_padded, _LANES), dtype)),
            grid_spec=pltpu.PrefetchScalarGridSpec(
                num_scalar_prefetch=0, grid=grid,
                in_specs=[blk, blk], out_specs=[blk, blk]),
            compiler_params=pltpu.CompilerParams(
                dimension_semantics=("parallel",)),
        )(mu_slab, logstd_slab)
        mu_out = mu_o.reshape(-1)[:n].reshape(orig_shape)
        sigma = sigma_o.reshape(-1)[:n].reshape(orig_shape)
    else:
        kernel = _sigma_only_kernel_factory(dist_type, minstd, maxstd, minlogstd, maxlogstd)
        sigma_o = pl.pallas_call(
            kernel,
            out_shape=jax.ShapeDtypeStruct((rows_padded, _LANES), dtype),
            grid_spec=pltpu.PrefetchScalarGridSpec(
                num_scalar_prefetch=0, grid=grid,
                in_specs=[blk], out_specs=blk),
            compiler_params=pltpu.CompilerParams(
                dimension_semantics=("parallel",)),
        )(logstd_slab)
        mu_out = mu                                  # identity: don't round-trip mu via HBM
        sigma = sigma_o.reshape(-1)[:n].reshape(orig_shape)

    return mu_out, sigma


def _reference(mu, logstd, dist_type, minstd, maxstd, minlogstd, maxlogstd):
    if minlogstd is not None:
        minstd = float(np.exp(minlogstd))
    if maxlogstd is not None:
        maxstd = float(np.exp(maxlogstd))
    return _forward_jnp(mu, logstd, dist_type, minstd, maxstd, minlogstd, maxlogstd)


if __name__ == "__main__":
    key = jax.random.PRNGKey(0)
    k_mu, k_ls = jax.random.split(key)
    # Small RL-head shape: batch=16, action_dim=12 (not a multiple of 128 ->
    # exercises the lane-dense flatten/pad path).
    B, D = 16, 12
    mu = jax.random.normal(k_mu, (B, D), dtype=jnp.float32)
    logstd = 0.5 * jax.random.normal(k_ls, (B, D), dtype=jnp.float32)

    configs = [
        dict(dist_type='normal', minstd=1.0, maxstd=1.0,
             minlogstd=None, maxlogstd=None),
        dict(dist_type='squashed_normal', minstd=1.0, maxstd=1.0,
             minlogstd=-2.0, maxlogstd=1.0),
        dict(dist_type='dreamerv3_normal', minstd=0.1, maxstd=2.0,
             minlogstd=None, maxlogstd=None),
        dict(dist_type='dreamerv3_squashed_normal', minstd=0.1, maxstd=2.0,
             minlogstd=None, maxlogstd=None),
    ]

    ok = True
    for cfg in configs:
        # force_pallas=True so the Pallas path (not the small-shape jnp fallback) is tested.
        mu_k, sig_k = dist_forward(mu, logstd, force_pallas=True, **cfg)
        jax.block_until_ready((mu_k, sig_k))
        mu_r, sig_r = _reference(mu, logstd, cfg['dist_type'], cfg['minstd'],
                                 cfg['maxstd'], cfg['minlogstd'], cfg['maxlogstd'])
        ok &= bool(jnp.allclose(mu_k, mu_r, atol=1e-5, rtol=1e-5))
        ok &= bool(jnp.allclose(sig_k, sig_r, atol=1e-5, rtol=1e-5))

    # Also sanity-check the auto (small-shape fallback) path runs.
    mu_a, sig_a = dist_forward(mu, logstd, **configs[0])
    jax.block_until_ready((mu_a, sig_a))
    ok &= bool(jnp.allclose(sig_a, jnp.exp(logstd), atol=1e-5, rtol=1e-5))

    print("KERNEL_OK" if ok else "KERNEL_MISMATCH")
</pallas_src>

<mosaic_0001>
module attributes {stable_mosaic.version = 11 : i64} {
  func.func @kernel(%arg0: i32, %arg1: memref<32x128xf32, #tpu.memory_space<vmem>>, %arg2: memref<32x128xf32, #tpu.memory_space<vmem>>) attributes {dimension_semantics = [#tpu.dimension_semantics<parallel>], iteration_bounds = array<i64: 1>, scalar_prefetch = 0 : i64, scratch_operands = 0 : i64, tpu.core_type = #tpu.core_type<tc>, window_params = [{transform_indices = @transform_0, window_bounds = array<i64: 32, 128>}, {transform_indices = @transform_1, window_bounds = array<i64: 32, 128>}]} {
    %c0 = arith.constant 0 : index
    %c0_0 = arith.constant 0 : index
    %0 = vector.load %arg1[%c0, %c0_0] : memref<32x128xf32, #tpu.memory_space<vmem>>, vector<32x128xf32>
    %1 = math.exp %0 : vector<32x128xf32>
    %c0_1 = arith.constant 0 : index
    %c0_2 = arith.constant 0 : index
    %2 = vector.load %arg2[%c0_1, %c0_2] : memref<32x128xf32, #tpu.memory_space<vmem>>, vector<32x128xf32>
    tpu.vector_store %arg2[%c0_1, %c0_2], %1 {strides = array<i32>} : memref<32x128xf32, #tpu.memory_space<vmem>>, vector<32x128xf32>,
    return
  }
  func.func @transform_0(%arg0: i32) -> (i32, i32) {
    %c0_i32 = arith.constant 0 : i32
    %c0_i32_0 = arith.constant 0 : i32
    return %arg0, %c0_i32 : i32, i32
  }
  func.func @transform_1(%arg0: i32) -> (i32, i32) {
    %c0_i32 = arith.constant 0 : i32
    %c0_i32_0 = arith.constant 0 : i32
    return %arg0, %c0_i32 : i32, i32
  }
}

</mosaic_0001>

<bundles_post_ra>
// kernel: tpu_custom_call.1
= control target key start
LH: loop header
LB: loop body
LE: loop exit
PB: predicated region body
PF: predicated region fallthrough
CT: control target
= control target key end

     0   :  { %6 = vsyncpa [#allocation3], 0  ;;  %s160_s0 = inlined_call_operand.hbm [shape: f32[32,128], index: 0, kind: input, shape index: {}]   ;;  %s161_s1 = inlined_call_operand.hbm [shape: f32[32,128], index: 1, kind: output, shape index: {}]  }
   0x1   :  { %7 = vsyncpa [#allocation4], 0  ;;  %s116_s6 = smov [#allocation2]   ;;  %s68_s10 = scalar_lea.hbm %s160_s0, 512 }
   0x2   :  { %s13_s7 = sshll.u32 %s116_s6, 4  ;;  %p69_p0 = scmp.ne.s32.totalorder %s160_s0, %s68_s10  ;;  %s14_s7 = int_to_ptr.vmem [resolvable:$true] %s13_s7 }
   0x3   :  { %p72_p1 = scmp.lt.u32.totalorder %s68_s10, %s160_s0 }
   0x5   :  { %p74_p2 = pnand %p72_p1, %p69_p0 }
   0x7   :  { %77 = shalt.err (!%p74_p2)
}
   0x8   :  { %s78_s15 = scalar_lea.vmem %s14_s7, 512  ;;  %p83_p4 = scmp.lt.s32.totalorder %s14_s7, %s14_s7 }
   0x9   :  { %p79_p3 = scmp.ne.s32.totalorder %s14_s7, %s78_s15  ;;  %p84_p5 = scmp.lt.s32.totalorder %s78_s15, %s78_s15 }
   0xb   :  { %p85_p6 = por %p84_p5, %p83_p4 }
   0xd   :  { %p86_p7 = pnand %p85_p6, %p79_p3 }
   0xf   :  { %89 = shalt.err (!%p86_p7)
}
  0x10   :  { %s117_s16 = smov 128   ;;  %s118_s17 = smov 8  }
  0x11   :  { %19 = dma.hbm_to_vmem [thread:$0]  %s160_s0, 512, %s14_s7, [#allocation3], %s117_s16, %s117_s16, %s118_s17  }
  0x12   :  { %112 = dma.done.wait [#allocation3], 512  }
  0x13   :  { %113 = vsyncadd [#allocation3], 4294966784  ;;  %v23_v0 = vld [vmem:[#allocation2] sm:$0xff]  ;;  %v24_v1 = vld [vmem:[#allocation2 + $0x8] sm:$0xff]  ;;  %s119_s20 = smov [#allocation5]  }
  0x14   :  { %v25_v2 = vld [vmem:[#allocation2 + $0x10] sm:$0xff]  ;;  %v27_v3 = vmul.f32 1.442695, %v23_v0  ;;  %v29_v4 = vmul.f32 1.442695, %v24_v1  ;;  %v26_v6 = vld [vmem:[#allocation2 + $0x18] sm:$0xff] }
  0x15   :  { %v31_v5 = vmul.f32 1.442695, %v25_v2  ;;  %v33_v7 = vmul.f32 1.442695, %v26_v6  ;;  %s44_s21 = sshll.u32 %s119_s20, 4  ;;  %s45_s21 = int_to_ptr.vmem [resolvable:$true] %s44_s21 }
  0x16   :  { %60 = vpow2.f32 %v27_v3  ;;  %s90_s0 = scalar_lea.vmem %s45_s21, 512  ;;  %p95_p9 = scmp.lt.s32.totalorder %s45_s21, %s45_s21 }
  0x17   :  { %62 = vpow2.f32 %v29_v4  ;;  %p91_p8 = scmp.ne.s32.totalorder %s45_s21, %s90_s0  ;;  %p96_p10 = scmp.lt.s32.totalorder %s90_s0, %s90_s0 }
  0x18   :  { %64 = vpow2.f32 %v31_v5 }
  0x19   :  { %66 = vpow2.f32 %v33_v7  ;;  %p97_p11 = por %p96_p10, %p95_p9 }
  0x1b   :  { %p98_p12 = pnand %p97_p11, %p91_p8 }
  0x20   :  { %v61_v8 = vpop.eup %60 }
  0x21   :  { %v63_v9 = vpop.eup %62  ;;  %35 = vst [vmem:[#allocation5] sm:$0xff] %v61_v8 }
  0x22   :  { %v65_v10 = vpop.eup %64  ;;  %36 = vst [vmem:[#allocation5 + $0x8] sm:$0xff] %v63_v9 }
  0x23   :  { %v67_v11 = vpop.eup %66  ;;  %37 = vst [vmem:[#allocation5 + $0x10] sm:$0xff] %v65_v10 }
  0x24   :  { %38 = vst [vmem:[#allocation5 + $0x18] sm:$0xff] %v67_v11 }
  0x25   :  { %101 = shalt.err (!%p98_p12)
}
  0x26   :  { %s102_s24 = scalar_lea.hbm %s161_s1, 512 }
  0x27   :  { %p103_p13 = scmp.ne.s32.totalorder %s161_s1, %s102_s24  ;;  %p106_p0 = scmp.lt.u32.totalorder %s102_s24, %s161_s1 }
  0x29   :  { %p108_p1 = pnand %p106_p0, %p103_p13 }
  0x2b   :  { %111 = shalt.err (!%p108_p1)
}
  0x2c   :  { %50 = dma.vmem_to_hbm [thread:$0]  %s45_s21, 512, %s161_s1, [#allocation4], %s117_s16, %s117_s16, %s118_s17  }
  0x2d   :  { %114 = dma.done.wait [#allocation4], 512  }
  0x2e   :  { %115 = vsyncadd [#allocation4], 4294966784 }
  0x2f   :  { %54 = vsyncpa [#allocation3], 1 }
  0x30   :  { %55 = vsyncpa [#allocation4], 1 }

</bundles_post_ra>
